<compile_context>
chip_gen: v7x
topology: tpu7x:2x2x1
jax: 0.10.0
libtpu: 0.0.40
codegen_flags: <defaults>
</compile_context>

<pallas_src>
import jax
import jax.numpy as jnp
from jax.experimental import pallas as pl
from jax.experimental.pallas import tpu as pltpu


def _fullmodel_kernel(x_ref, w_ref, b_ref, prob_ref, pred_ref):
    """Fused 1x1-conv head + softmax max-prob + argmax for one pixel tile.

      x_ref    : (Cin, TR, 128)  input pixels (native dtype); pixels dense on
                 (sublane, lane), channels on the leading (untiled) axis.
      w_ref    : (NCLS, Cin) f32 in SMEM -- 1x1-conv weight, read as scalars.
      b_ref    : (NCLS,)     f32 in SMEM -- bias.
      prob_ref : (TR, 128) f32   max softmax probability per pixel.
      pred_ref : (TR, 128) i32   argmax class index per pixel.
    """
    ncls, cin = w_ref.shape

    # Upcast each channel slab once (no-op for f32, one VPU pass for bf16).
    x = [x_ref[c].astype(jnp.float32) for c in range(cin)]

    # Per-class logits via unrolled scalar*vector FMAs; bias folded into the
    # first term.  Running max / argmax tracked in int32; strict '>' keeps the
    # first maximal index on ties (torch.max convention).
    logits = []
    m = None
    idx = None
    for k in range(ncls):
        acc = x[0] * w_ref[k, 0] + b_ref[k]
        for c in range(1, cin):
            acc = acc + x[c] * w_ref[k, c]
        logits.append(acc)
        if k == 0:
            m = acc
            idx = jnp.zeros(acc.shape, jnp.int32)
        else:
            gt = acc > m
            m = jnp.where(gt, acc, m)
            idx = jnp.where(gt, k, idx)

    # max softmax prob == 1 / sum_k exp(logit_k - max)
    s = jnp.exp(logits[0] - m)
    for k in range(1, ncls):
        s = s + jnp.exp(logits[k] - m)

    prob_ref[...] = pl.reciprocal(s, approx=True)   # EUP vrcp; VALU stays free
    pred_ref[...] = idx


def _pick_row_tile(num_rows, batch, max_rows=512):
    """Rows of 128 pixels per block: multiple of 8 (or full extent), capped.

    max_rows=512 -> 65536 pixels / tile.  When batch == 1 the tile is capped
    near num_rows/2 so the pixel grid axis has >= 2 steps (both v7x cores).
    """
    if num_rows <= 8:
        return num_rows
    tr = (min(max_rows, num_rows) // 8) * 8
    if batch == 1 and num_rows >= 16:
        half = max(8, (((num_rows + 1) // 2 + 7) // 8) * 8)
        tr = min(tr, half)
    return max(tr, 8)


@jax.jit
def fullmodel_forward(x_nchw, weight, bias):
    """x_nchw: (N, Cin, H, W); weight: (NCLS, Cin); bias: (NCLS,).

    Returns (prob_mask, predictions), both (N, H, W); prob f32, pred int32.
    """
    N, Cin, H, W = x_nchw.shape
    HW = H * W
    LANES = 128

    # Free views only (plus a one-time pad for the rare non-128-aligned plane).
    x3 = x_nchw.reshape(N, Cin, HW)
    pad = (-HW) % LANES
    if pad:
        # TODO(synk): non-128-aligned H*W pays one extra HBM pass here.
        x3 = jnp.pad(x3, ((0, 0), (0, 0), (0, pad)))
    R = (HW + pad) // LANES
    x4 = x3.reshape(N, Cin, R, LANES)              # native dtype, free view

    TR = _pick_row_tile(R, N)
    grid = (N, pl.cdiv(R, TR))

    w2d = weight.astype(jnp.float32)               # (NCLS, Cin) -> SMEM
    b1d = bias.astype(jnp.float32)                 # (NCLS,)     -> SMEM

    prob4, pred4 = pl.pallas_call(
        _fullmodel_kernel,
        out_shape=(
            jax.ShapeDtypeStruct((N, R, LANES), jnp.float32),
            jax.ShapeDtypeStruct((N, R, LANES), jnp.int32),
        ),
        grid_spec=pltpu.PrefetchScalarGridSpec(
            num_scalar_prefetch=0,
            grid=grid,
            in_specs=[
                pl.BlockSpec((None, Cin, TR, LANES), lambda n, r: (n, 0, r, 0)),
                pl.BlockSpec(memory_space=pltpu.MemorySpace.SMEM),
                pl.BlockSpec(memory_space=pltpu.MemorySpace.SMEM),
            ],
            out_specs=[
                pl.BlockSpec((None, TR, LANES), lambda n, r: (n, r, 0)),
                pl.BlockSpec((None, TR, LANES), lambda n, r: (n, r, 0)),
            ],
        ),
        compiler_params=pltpu.CompilerParams(
            dimension_semantics=("parallel", "parallel"),
            vmem_limit_bytes=48 * 1024 * 1024),
    )(x4, w2d, b1d)

    prob_mask = prob4.reshape(N, R * LANES)[:, :HW].reshape(N, H, W)
    predictions = pred4.reshape(N, R * LANES)[:, :HW].reshape(N, H, W)
    return prob_mask, predictions


if __name__ == "__main__":
    # Small deterministic example: batch=2, in-channels=4, spatial=16x16,
    # NUM_CLASSES=8 (the inner 1x1-conv segmentation head).
    N, CIN, H, W = 2, 4, 16, 16
    NUM_CLASSES = 8

    key = jax.random.PRNGKey(0)
    kx, kw, kb = jax.random.split(key, 3)
    x = jax.random.normal(kx, (N, CIN, H, W), dtype=jnp.float32)
    weight = jax.random.normal(kw, (NUM_CLASSES, CIN), dtype=jnp.float32) * 0.1
    bias = jax.random.normal(kb, (NUM_CLASSES,), dtype=jnp.float32) * 0.01

    prob_mask, predictions = fullmodel_forward(x, weight, bias)
    jax.block_until_ready((prob_mask, predictions))

    # Pure-JAX reference of the same forward pass.
    logits_ref = jnp.einsum("nchw,kc->nkhw", x, weight) + bias[None, :, None, None]
    sm_ref = jax.nn.softmax(logits_ref, axis=1)
    prob_ref = jnp.max(sm_ref, axis=1)
    pred_ref = jnp.argmax(sm_ref, axis=1).astype(jnp.int32)
    # approx reciprocal => ~1e-3 relative accuracy on the probability.
    assert jnp.allclose(prob_mask, prob_ref, atol=2e-3), "prob_mask mismatch"
    assert jnp.array_equal(predictions, pred_ref), "predictions mismatch"

    print("KERNEL_OK")
</pallas_src>

<mosaic_0001>
module attributes {stable_mosaic.version = 11 : i64} {
  func.func @_fullmodel_kernel(%arg0: i32, %arg1: i32, %arg2: memref<1x4x2x128xf32, #tpu.memory_space<vmem>>, %arg3: memref<8x4xf32, #tpu.memory_space<smem>>, %arg4: memref<8xf32, #tpu.memory_space<smem>>, %arg5: memref<1x2x128xf32, #tpu.memory_space<vmem>>, %arg6: memref<1x2x128xi32, #tpu.memory_space<vmem>>) attributes {dimension_semantics = [#tpu.dimension_semantics<parallel>, #tpu.dimension_semantics<parallel>], iteration_bounds = array<i64: 2, 1>, scalar_prefetch = 0 : i64, scratch_operands = 0 : i64, tpu.core_type = #tpu.core_type<tc>, window_params = [{transform_indices = @transform_0, window_bounds = array<i64: 1, 4, 2, 128>}, {transform_indices = @transform_1, window_bounds = array<i64: 8, 4>}, {transform_indices = @transform_2, window_bounds = array<i64: 8>}, {transform_indices = @transform_3, window_bounds = array<i64: 1, 2, 128>}, {transform_indices = @transform_4, window_bounds = array<i64: 1, 2, 128>}]} {
    %c0 = arith.constant 0 : index
    %c0_0 = arith.constant 0 : index
    %c0_1 = arith.constant 0 : index
    %c0_2 = arith.constant 0 : index
    %0 = vector.load %arg2[%c0, %c0_0, %c0_1, %c0_2] : memref<1x4x2x128xf32, #tpu.memory_space<vmem>>, vector<1x1x2x128xf32>
    %1 = vector.shape_cast %0 : vector<1x1x2x128xf32> to vector<2x128xf32>
    %c0_3 = arith.constant 0 : index
    %c1 = arith.constant 1 : index
    %c0_4 = arith.constant 0 : index
    %c0_5 = arith.constant 0 : index
    %2 = vector.load %arg2[%c0_3, %c1, %c0_4, %c0_5] : memref<1x4x2x128xf32, #tpu.memory_space<vmem>>, vector<1x1x2x128xf32>
    %3 = vector.shape_cast %2 : vector<1x1x2x128xf32> to vector<2x128xf32>
    %c0_6 = arith.constant 0 : index
    %c2 = arith.constant 2 : index
    %c0_7 = arith.constant 0 : index
    %c0_8 = arith.constant 0 : index
    %4 = vector.load %arg2[%c0_6, %c2, %c0_7, %c0_8] : memref<1x4x2x128xf32, #tpu.memory_space<vmem>>, vector<1x1x2x128xf32>
    %5 = vector.shape_cast %4 : vector<1x1x2x128xf32> to vector<2x128xf32>
    %c0_9 = arith.constant 0 : index
    %c3 = arith.constant 3 : index
    %c0_10 = arith.constant 0 : index
    %c0_11 = arith.constant 0 : index
    %6 = vector.load %arg2[%c0_9, %c3, %c0_10, %c0_11] : memref<1x4x2x128xf32, #tpu.memory_space<vmem>>, vector<1x1x2x128xf32>
    %7 = vector.shape_cast %6 : vector<1x1x2x128xf32> to vector<2x128xf32>
    %c0_12 = arith.constant 0 : index
    %c0_13 = arith.constant 0 : index
    %8 = memref.load %arg3[%c0_12, %c0_13] : memref<8x4xf32, #tpu.memory_space<smem>>
    %9 = vector.broadcast %8 : f32 to vector<2x128xf32>
    %10 = arith.mulf %1, %9 : vector<2x128xf32>
    %c0_14 = arith.constant 0 : index
    %11 = memref.load %arg4[%c0_14] : memref<8xf32, #tpu.memory_space<smem>>
    %12 = vector.broadcast %11 : f32 to vector<2x128xf32>
    %13 = arith.addf %10, %12 : vector<2x128xf32>
    %c0_15 = arith.constant 0 : index
    %c1_16 = arith.constant 1 : index
    %14 = memref.load %arg3[%c0_15, %c1_16] : memref<8x4xf32, #tpu.memory_space<smem>>
    %15 = vector.broadcast %14 : f32 to vector<2x128xf32>
    %16 = arith.mulf %3, %15 : vector<2x128xf32>
    %17 = arith.addf %13, %16 : vector<2x128xf32>
    %c0_17 = arith.constant 0 : index
    %c2_18 = arith.constant 2 : index
    %18 = memref.load %arg3[%c0_17, %c2_18] : memref<8x4xf32, #tpu.memory_space<smem>>
    %19 = vector.broadcast %18 : f32 to vector<2x128xf32>
    %20 = arith.mulf %5, %19 : vector<2x128xf32>
    %21 = arith.addf %17, %20 : vector<2x128xf32>
    %c0_19 = arith.constant 0 : index
    %c3_20 = arith.constant 3 : index
    %22 = memref.load %arg3[%c0_19, %c3_20] : memref<8x4xf32, #tpu.memory_space<smem>>
    %23 = vector.broadcast %22 : f32 to vector<2x128xf32>
    %24 = arith.mulf %7, %23 : vector<2x128xf32>
    %25 = arith.addf %21, %24 : vector<2x128xf32>
    %c0_i32 = arith.constant 0 : i32
    %26 = vector.broadcast %c0_i32 : i32 to vector<2x128xi32>
    %c1_21 = arith.constant 1 : index
    %c0_22 = arith.constant 0 : index
    %27 = memref.load %arg3[%c1_21, %c0_22] : memref<8x4xf32, #tpu.memory_space<smem>>
    %28 = vector.broadcast %27 : f32 to vector<2x128xf32>
    %29 = arith.mulf %1, %28 : vector<2x128xf32>
    %c1_23 = arith.constant 1 : index
    %30 = memref.load %arg4[%c1_23] : memref<8xf32, #tpu.memory_space<smem>>
    %31 = vector.broadcast %30 : f32 to vector<2x128xf32>
    %32 = arith.addf %29, %31 : vector<2x128xf32>
    %c1_24 = arith.constant 1 : index
    %c1_25 = arith.constant 1 : index
    %33 = memref.load %arg3[%c1_24, %c1_25] : memref<8x4xf32, #tpu.memory_space<smem>>
    %34 = vector.broadcast %33 : f32 to vector<2x128xf32>
    %35 = arith.mulf %3, %34 : vector<2x128xf32>
    %36 = arith.addf %32, %35 : vector<2x128xf32>
    %c1_26 = arith.constant 1 : index
    %c2_27 = arith.constant 2 : index
    %37 = memref.load %arg3[%c1_26, %c2_27] : memref<8x4xf32, #tpu.memory_space<smem>>
    %38 = vector.broadcast %37 : f32 to vector<2x128xf32>
    %39 = arith.mulf %5, %38 : vector<2x128xf32>
    %40 = arith.addf %36, %39 : vector<2x128xf32>
    %c1_28 = arith.constant 1 : index
    %c3_29 = arith.constant 3 : index
    %41 = memref.load %arg3[%c1_28, %c3_29] : memref<8x4xf32, #tpu.memory_space<smem>>
    %42 = vector.broadcast %41 : f32 to vector<2x128xf32>
    %43 = arith.mulf %7, %42 : vector<2x128xf32>
    %44 = arith.addf %40, %43 : vector<2x128xf32>
    %45 = arith.cmpf ogt, %44, %25 : vector<2x128xf32>
    %46 = arith.select %45, %44, %25 : vector<2x128xi1>, vector<2x128xf32>
    %c1_i32 = arith.constant 1 : i32
    %47 = vector.broadcast %c1_i32 : i32 to vector<2x128xi32>
    %48 = arith.select %45, %47, %26 : vector<2x128xi1>, vector<2x128xi32>
    %c2_30 = arith.constant 2 : index
    %c0_31 = arith.constant 0 : index
    %49 = memref.load %arg3[%c2_30, %c0_31] : memref<8x4xf32, #tpu.memory_space<smem>>
    %50 = vector.broadcast %49 : f32 to vector<2x128xf32>
    %51 = arith.mulf %1, %50 : vector<2x128xf32>
    %c2_32 = arith.constant 2 : index
    %52 = memref.load %arg4[%c2_32] : memref<8xf32, #tpu.memory_space<smem>>
    %53 = vector.broadcast %52 : f32 to vector<2x128xf32>
    %54 = arith.addf %51, %53 : vector<2x128xf32>
    %c2_33 = arith.constant 2 : index
    %c1_34 = arith.constant 1 : index
    %55 = memref.load %arg3[%c2_33, %c1_34] : memref<8x4xf32, #tpu.memory_space<smem>>
    %56 = vector.broadcast %55 : f32 to vector<2x128xf32>
    %57 = arith.mulf %3, %56 : vector<2x128xf32>
    %58 = arith.addf %54, %57 : vector<2x128xf32>
    %c2_35 = arith.constant 2 : index
    %c2_36 = arith.constant 2 : index
    %59 = memref.load %arg3[%c2_35, %c2_36] : memref<8x4xf32, #tpu.memory_space<smem>>
    %60 = vector.broadcast %59 : f32 to vector<2x128xf32>
    %61 = arith.mulf %5, %60 : vector<2x128xf32>
    %62 = arith.addf %58, %61 : vector<2x128xf32>
    %c2_37 = arith.constant 2 : index
    %c3_38 = arith.constant 3 : index
    %63 = memref.load %arg3[%c2_37, %c3_38] : memref<8x4xf32, #tpu.memory_space<smem>>
    %64 = vector.broadcast %63 : f32 to vector<2x128xf32>
    %65 = arith.mulf %7, %64 : vector<2x128xf32>
    %66 = arith.addf %62, %65 : vector<2x128xf32>
    %67 = arith.cmpf ogt, %66, %46 : vector<2x128xf32>
    %68 = arith.select %67, %66, %46 : vector<2x128xi1>, vector<2x128xf32>
    %c2_i32 = arith.constant 2 : i32
    %69 = vector.broadcast %c2_i32 : i32 to vector<2x128xi32>
    %70 = arith.select %67, %69, %48 : vector<2x128xi1>, vector<2x128xi32>
    %c3_39 = arith.constant 3 : index
    %c0_40 = arith.constant 0 : index
    %71 = memref.load %arg3[%c3_39, %c0_40] : memref<8x4xf32, #tpu.memory_space<smem>>
    %72 = vector.broadcast %71 : f32 to vector<2x128xf32>
    %73 = arith.mulf %1, %72 : vector<2x128xf32>
    %c3_41 = arith.constant 3 : index
    %74 = memref.load %arg4[%c3_41] : memref<8xf32, #tpu.memory_space<smem>>
    %75 = vector.broadcast %74 : f32 to vector<2x128xf32>
    %76 = arith.addf %73, %75 : vector<2x128xf32>
    %c3_42 = arith.constant 3 : index
    %c1_43 = arith.constant 1 : index
    %77 = memref.load %arg3[%c3_42, %c1_43] : memref<8x4xf32, #tpu.memory_space<smem>>
    %78 = vector.broadcast %77 : f32 to vector<2x128xf32>
    %79 = arith.mulf %3, %78 : vector<2x128xf32>
    %80 = arith.addf %76, %79 : vector<2x128xf32>
    %c3_44 = arith.constant 3 : index
    %c2_45 = arith.constant 2 : index
    %81 = memref.load %arg3[%c3_44, %c2_45] : memref<8x4xf32, #tpu.memory_space<smem>>
    %82 = vector.broadcast %81 : f32 to vector<2x128xf32>
    %83 = arith.mulf %5, %82 : vector<2x128xf32>
    %84 = arith.addf %80, %83 : vector<2x128xf32>
    %c3_46 = arith.constant 3 : index
    %c3_47 = arith.constant 3 : index
    %85 = memref.load %arg3[%c3_46, %c3_47] : memref<8x4xf32, #tpu.memory_space<smem>>
    %86 = vector.broadcast %85 : f32 to vector<2x128xf32>
    %87 = arith.mulf %7, %86 : vector<2x128xf32>
    %88 = arith.addf %84, %87 : vector<2x128xf32>
    %89 = arith.cmpf ogt, %88, %68 : vector<2x128xf32>
    %90 = arith.select %89, %88, %68 : vector<2x128xi1>, vector<2x128xf32>
    %c3_i32 = arith.constant 3 : i32
    %91 = vector.broadcast %c3_i32 : i32 to vector<2x128xi32>
    %92 = arith.select %89, %91, %70 : vector<2x128xi1>, vector<2x128xi32>
    %c4 = arith.constant 4 : index
    %c0_48 = arith.constant 0 : index
    %93 = memref.load %arg3[%c4, %c0_48] : memref<8x4xf32, #tpu.memory_space<smem>>
    %94 = vector.broadcast %93 : f32 to vector<2x128xf32>
    %95 = arith.mulf %1, %94 : vector<2x128xf32>
    %c4_49 = arith.constant 4 : index
    %96 = memref.load %arg4[%c4_49] : memref<8xf32, #tpu.memory_space<smem>>
    %97 = vector.broadcast %96 : f32 to vector<2x128xf32>
    %98 = arith.addf %95, %97 : vector<2x128xf32>
    %c4_50 = arith.constant 4 : index
    %c1_51 = arith.constant 1 : index
    %99 = memref.load %arg3[%c4_50, %c1_51] : memref<8x4xf32, #tpu.memory_space<smem>>
    %100 = vector.broadcast %99 : f32 to vector<2x128xf32>
    %101 = arith.mulf %3, %100 : vector<2x128xf32>
    %102 = arith.addf %98, %101 : vector<2x128xf32>
    %c4_52 = arith.constant 4 : index
    %c2_53 = arith.constant 2 : index
    %103 = memref.load %arg3[%c4_52, %c2_53] : memref<8x4xf32, #tpu.memory_space<smem>>
    %104 = vector.broadcast %103 : f32 to vector<2x128xf32>
    %105 = arith.mulf %5, %104 : vector<2x128xf32>
    %106 = arith.addf %102, %105 : vector<2x128xf32>
    %c4_54 = arith.constant 4 : index
    %c3_55 = arith.constant 3 : index
    %107 = memref.load %arg3[%c4_54, %c3_55] : memref<8x4xf32, #tpu.memory_space<smem>>
    %108 = vector.broadcast %107 : f32 to vector<2x128xf32>
    %109 = arith.mulf %7, %108 : vector<2x128xf32>
    %110 = arith.addf %106, %109 : vector<2x128xf32>
    %111 = arith.cmpf ogt, %110, %90 : vector<2x128xf32>
    %112 = arith.select %111, %110, %90 : vector<2x128xi1>, vector<2x128xf32>
    %c4_i32 = arith.constant 4 : i32
    %113 = vector.broadcast %c4_i32 : i32 to vector<2x128xi32>
    %114 = arith.select %111, %113, %92 : vector<2x128xi1>, vector<2x128xi32>
    %c5 = arith.constant 5 : index
    %c0_56 = arith.constant 0 : index
    %115 = memref.load %arg3[%c5, %c0_56] : memref<8x4xf32, #tpu.memory_space<smem>>
    %116 = vector.broadcast %115 : f32 to vector<2x128xf32>
    %117 = arith.mulf %1, %116 : vector<2x128xf32>
    %c5_57 = arith.constant 5 : index
    %118 = memref.load %arg4[%c5_57] : memref<8xf32, #tpu.memory_space<smem>>
    %119 = vector.broadcast %118 : f32 to vector<2x128xf32>
    %120 = arith.addf %117, %119 : vector<2x128xf32>
    %c5_58 = arith.constant 5 : index
    %c1_59 = arith.constant 1 : index
    %121 = memref.load %arg3[%c5_58, %c1_59] : memref<8x4xf32, #tpu.memory_space<smem>>
    %122 = vector.broadcast %121 : f32 to vector<2x128xf32>
    %123 = arith.mulf %3, %122 : vector<2x128xf32>
    %124 = arith.addf %120, %123 : vector<2x128xf32>
    %c5_60 = arith.constant 5 : index
    %c2_61 = arith.constant 2 : index
    %125 = memref.load %arg3[%c5_60, %c2_61] : memref<8x4xf32, #tpu.memory_space<smem>>
    %126 = vector.broadcast %125 : f32 to vector<2x128xf32>
    %127 = arith.mulf %5, %126 : vector<2x128xf32>
    %128 = arith.addf %124, %127 : vector<2x128xf32>
    %c5_62 = arith.constant 5 : index
    %c3_63 = arith.constant 3 : index
    %129 = memref.load %arg3[%c5_62, %c3_63] : memref<8x4xf32, #tpu.memory_space<smem>>
    %130 = vector.broadcast %129 : f32 to vector<2x128xf32>
    %131 = arith.mulf %7, %130 : vector<2x128xf32>
    %132 = arith.addf %128, %131 : vector<2x128xf32>
    %133 = arith.cmpf ogt, %132, %112 : vector<2x128xf32>
    %134 = arith.select %133, %132, %112 : vector<2x128xi1>, vector<2x128xf32>
    %c5_i32 = arith.constant 5 : i32
    %135 = vector.broadcast %c5_i32 : i32 to vector<2x128xi32>
    %136 = arith.select %133, %135, %114 : vector<2x128xi1>, vector<2x128xi32>
    %c6 = arith.constant 6 : index
    %c0_64 = arith.constant 0 : index
    %137 = memref.load %arg3[%c6, %c0_64] : memref<8x4xf32, #tpu.memory_space<smem>>
    %138 = vector.broadcast %137 : f32 to vector<2x128xf32>
    %139 = arith.mulf %1, %138 : vector<2x128xf32>
    %c6_65 = arith.constant 6 : index
    %140 = memref.load %arg4[%c6_65] : memref<8xf32, #tpu.memory_space<smem>>
    %141 = vector.broadcast %140 : f32 to vector<2x128xf32>
    %142 = arith.addf %139, %141 : vector<2x128xf32>
    %c6_66 = arith.constant 6 : index
    %c1_67 = arith.constant 1 : index
    %143 = memref.load %arg3[%c6_66, %c1_67] : memref<8x4xf32, #tpu.memory_space<smem>>
    %144 = vector.broadcast %143 : f32 to vector<2x128xf32>
    %145 = arith.mulf %3, %144 : vector<2x128xf32>
    %146 = arith.addf %142, %145 : vector<2x128xf32>
    %c6_68 = arith.constant 6 : index
    %c2_69 = arith.constant 2 : index
    %147 = memref.load %arg3[%c6_68, %c2_69] : memref<8x4xf32, #tpu.memory_space<smem>>
    %148 = vector.broadcast %147 : f32 to vector<2x128xf32>
    %149 = arith.mulf %5, %148 : vector<2x128xf32>
    %150 = arith.addf %146, %149 : vector<2x128xf32>
    %c6_70 = arith.constant 6 : index
    %c3_71 = arith.constant 3 : index
    %151 = memref.load %arg3[%c6_70, %c3_71] : memref<8x4xf32, #tpu.memory_space<smem>>
    %152 = vector.broadcast %151 : f32 to vector<2x128xf32>
    %153 = arith.mulf %7, %152 : vector<2x128xf32>
    %154 = arith.addf %150, %153 : vector<2x128xf32>
    %155 = arith.cmpf ogt, %154, %134 : vector<2x128xf32>
    %156 = arith.select %155, %154, %134 : vector<2x128xi1>, vector<2x128xf32>
    %c6_i32 = arith.constant 6 : i32
    %157 = vector.broadcast %c6_i32 : i32 to vector<2x128xi32>
    %158 = arith.select %155, %157, %136 : vector<2x128xi1>, vector<2x128xi32>
    %c7 = arith.constant 7 : index
    %c0_72 = arith.constant 0 : index
    %159 = memref.load %arg3[%c7, %c0_72] : memref<8x4xf32, #tpu.memory_space<smem>>
    %160 = vector.broadcast %159 : f32 to vector<2x128xf32>
    %161 = arith.mulf %1, %160 : vector<2x128xf32>
    %c7_73 = arith.constant 7 : index
    %162 = memref.load %arg4[%c7_73] : memref<8xf32, #tpu.memory_space<smem>>
    %163 = vector.broadcast %162 : f32 to vector<2x128xf32>
    %164 = arith.addf %161, %163 : vector<2x128xf32>
    %c7_74 = arith.constant 7 : index
    %c1_75 = arith.constant 1 : index
    %165 = memref.load %arg3[%c7_74, %c1_75] : memref<8x4xf32, #tpu.memory_space<smem>>
    %166 = vector.broadcast %165 : f32 to vector<2x128xf32>
    %167 = arith.mulf %3, %166 : vector<2x128xf32>
    %168 = arith.addf %164, %167 : vector<2x128xf32>
    %c7_76 = arith.constant 7 : index
    %c2_77 = arith.constant 2 : index
    %169 = memref.load %arg3[%c7_76, %c2_77] : memref<8x4xf32, #tpu.memory_space<smem>>
    %170 = vector.broadcast %169 : f32 to vector<2x128xf32>
    %171 = arith.mulf %5, %170 : vector<2x128xf32>
    %172 = arith.addf %168, %171 : vector<2x128xf32>
    %c7_78 = arith.constant 7 : index
    %c3_79 = arith.constant 3 : index
    %173 = memref.load %arg3[%c7_78, %c3_79] : memref<8x4xf32, #tpu.memory_space<smem>>
    %174 = vector.broadcast %173 : f32 to vector<2x128xf32>
    %175 = arith.mulf %7, %174 : vector<2x128xf32>
    %176 = arith.addf %172, %175 : vector<2x128xf32>
    %177 = arith.cmpf ogt, %176, %156 : vector<2x128xf32>
    %178 = arith.select %177, %176, %156 : vector<2x128xi1>, vector<2x128xf32>
    %c7_i32 = arith.constant 7 : i32
    %179 = vector.broadcast %c7_i32 : i32 to vector<2x128xi32>
    %180 = arith.select %177, %179, %158 : vector<2x128xi1>, vector<2x128xi32>
    %181 = arith.subf %25, %178 : vector<2x128xf32>
    %182 = math.exp %181 : vector<2x128xf32>
    %183 = arith.subf %44, %178 : vector<2x128xf32>
    %184 = math.exp %183 : vector<2x128xf32>
    %185 = arith.addf %182, %184 : vector<2x128xf32>
    %186 = arith.subf %66, %178 : vector<2x128xf32>
    %187 = math.exp %186 : vector<2x128xf32>
    %188 = arith.addf %185, %187 : vector<2x128xf32>
    %189 = arith.subf %88, %178 : vector<2x128xf32>
    %190 = math.exp %189 : vector<2x128xf32>
    %191 = arith.addf %188, %190 : vector<2x128xf32>
    %192 = arith.subf %110, %178 : vector<2x128xf32>
    %193 = math.exp %192 : vector<2x128xf32>
    %194 = arith.addf %191, %193 : vector<2x128xf32>
    %195 = arith.subf %132, %178 : vector<2x128xf32>
    %196 = math.exp %195 : vector<2x128xf32>
    %197 = arith.addf %194, %196 : vector<2x128xf32>
    %198 = arith.subf %154, %178 : vector<2x128xf32>
    %199 = math.exp %198 : vector<2x128xf32>
    %200 = arith.addf %197, %199 : vector<2x128xf32>
    %201 = arith.subf %176, %178 : vector<2x128xf32>
    %202 = math.exp %201 : vector<2x128xf32>
    %203 = arith.addf %200, %202 : vector<2x128xf32>
    %204 = tpu.reciprocal %203 {approx = true} : vector<2x128xf32> -> vector<2x128xf32>
    %c0_80 = arith.constant 0 : index
    %c0_81 = arith.constant 0 : index
    %c0_82 = arith.constant 0 : index
    %205 = vector.load %arg5[%c0_80, %c0_81, %c0_82] : memref<1x2x128xf32, #tpu.memory_space<vmem>>, vector<1x2x128xf32>
    %206 = vector.shape_cast %205 : vector<1x2x128xf32> to vector<2x128xf32>
    %207 = vector.shape_cast %204 : vector<2x128xf32> to vector<1x2x128xf32>
    tpu.vector_store %arg5[%c0_80, %c0_81, %c0_82], %207 {strides = array<i32>} : memref<1x2x128xf32, #tpu.memory_space<vmem>>, vector<1x2x128xf32>,
    %c0_83 = arith.constant 0 : index
    %c0_84 = arith.constant 0 : index
    %c0_85 = arith.constant 0 : index
    %208 = vector.load %arg6[%c0_83, %c0_84, %c0_85] : memref<1x2x128xi32, #tpu.memory_space<vmem>>, vector<1x2x128xi32>
    %209 = vector.shape_cast %208 : vector<1x2x128xi32> to vector<2x128xi32>
    %210 = vector.shape_cast %180 : vector<2x128xi32> to vector<1x2x128xi32>
    tpu.vector_store %arg6[%c0_83, %c0_84, %c0_85], %210 {strides = array<i32>} : memref<1x2x128xi32, #tpu.memory_space<vmem>>, vector<1x2x128xi32>,
    return
  }
  func.func @transform_0(%arg0: i32, %arg1: i32) -> (i32, i32, i32, i32) {
    %c0_i32 = arith.constant 0 : i32
    %c0_i32_0 = arith.constant 0 : i32
    %c0_i32_1 = arith.constant 0 : i32
    return %arg0, %c0_i32, %arg1, %c0_i32_0 : i32, i32, i32, i32
  }
  func.func @transform_1(%arg0: i32, %arg1: i32) -> (i32, i32) {
    %c0_i32 = arith.constant 0 : i32
    %c0_i32_0 = arith.constant 0 : i32
    %c0_i32_1 = arith.constant 0 : i32
    return %c0_i32, %c0_i32_0 : i32, i32
  }
  func.func @transform_2(%arg0: i32, %arg1: i32) -> i32 {
    %c0_i32 = arith.constant 0 : i32
    %c0_i32_0 = arith.constant 0 : i32
    return %c0_i32 : i32
  }
  func.func @transform_3(%arg0: i32, %arg1: i32) -> (i32, i32, i32) {
    %c0_i32 = arith.constant 0 : i32
    %c0_i32_0 = arith.constant 0 : i32
    return %arg0, %arg1, %c0_i32 : i32, i32, i32
  }
  func.func @transform_4(%arg0: i32, %arg1: i32) -> (i32, i32, i32) {
    %c0_i32 = arith.constant 0 : i32
    %c0_i32_0 = arith.constant 0 : i32
    return %arg0, %arg1, %c0_i32 : i32, i32, i32
  }
}

</mosaic_0001>

<bundles_post_ra>
// kernel: fullmodel_forward.1
= control target key start
LH: loop header
LB: loop body
LE: loop exit
PB: predicated region body
PF: predicated region fallthrough
CT: control target
= control target key end

     0   :  { %10 = vsyncpa [#allocation3], 0  ;;  %s1073_s0 = inlined_call_operand.vmem [shape: f32[2,4,2,128], index: 0, kind: input, shape index: {}]   ;;  %s1074_s1 = inlined_call_operand.vmem [shape: f32[8,4], index: 1, kind: input, shape index: {}]   ;;  %s1075_s2 = inlined_call_operand.vmem [shape: f32[8], index: 2, kind: input, shape index: {}]   ;;  %s1076_s3 = inlined_call_operand.vmem [shape: f32[2,2,128], index: 3, kind: output, shape index: {0}]   ;;  %s1077_s4 = inlined_call_operand.vmem [shape: s32[2,2,128], index: 4, kind: output, shape index: {1}]  }
   0x1   :  { %11 = vsyncpa [#allocation5], 0  ;;  %s831_s15 = smov 0   ;;  %s833_s16 = smov 0  }
   0x2   :  { %s835_s17 = smov 0  }
   0x3 LB: > { %s620_s18 = sadd.s32 4294967295, %s801_s17   ;;  %s29_s19 = sadd.s32 1, %s797_s16  ;;  %s801_s17 = sphi %s835_s17, %s17_s17   ;;  %s797_s16 = sphi %s833_s16, %s1087_s16   ;;  %s793_s15 = sphi %s831_s15, %s1086_s15  }
   0x4   : > { %p31_p0 = scmp.ge.s32.totalorder %s29_s19, 2  ;;  %p622_p1 = scmp.ge.s32.totalorder %s801_s17, 1 }
   0x5   : > { %p160_p2 = scmp.lt.s32.totalorder %s801_s17, 3  ;;  %p856_p4 = scmp.eq.s32.totalorder %s620_s18, 0 }
   0x6   : > { %s1089_s19 = smov (%p31_p0, %s29_s19), 0  ;;  %s173_s24 = sshll.u32 %s1074_s1, 4  ;;  %s174_s24 = int_to_ptr.vmem [resolvable:$true] %s173_s24 }
   0x7   : > { %p852_p3 = pnand %p622_p1, %p160_p2  ;;  %s184_s27 = sshll.u32 %s1075_s2, 4  ;;  %s185_s27 = int_to_ptr.vmem [resolvable:$true] %s184_s27 }
   0x8   : > { %s1082_s21 = scalar_select %p856_p4, 1, 0 }
   0x9   : > { %s1081_s20 = scalar_select %p852_p3, 1, 0 }
   0xa   : > { %p685_p5 = pneg %p852_p3  ;;  %s741_s29 = scalar_lea.vmem %s174_s24, 128 }
   0xb   : > { %p742_p7 = scmp.ne.s32.totalorder %s174_s24, %s741_s29  ;;  %p749_p11 = scmp.lt.s32.totalorder %s174_s24, %s174_s24 }
   0xc   : > { %p870_p6 = pnand %p856_p4, %p685_p5  ;;  %p750_p12 = scmp.lt.s32.totalorder %s741_s29, %s741_s29 }
   0xe   : > { %p743_p8 = pneg %p870_p6  ;;  %p751_p13 = por %p750_p12, %p749_p11 }
  0x10   : > { %p744_p9 = pnand %p743_p8, %p742_p7 }
  0x12   : > { %p745_p10 = pneg %p744_p9 }
  0x14   : > { %p752_p0 = pnand %p751_p13, %p745_p10 }
  0x16   : > { %755 = shalt.err (!%p752_p0)
}
  0x17   : > { %s803_s30 = smov [#allocation2]   ;;  %s756_s5 = scalar_lea.vmem %s185_s27, 16 }
  0x18   : > { %688 = dma.vmem_to_smem (!%p870_p6), %s174_s24, 128, %s803_s30, [#allocation3]  }
  0x19   : > { %p757_p1 = scmp.ne.s32.totalorder %s185_s27, %s756_s5  ;;  %p764_p4 = scmp.lt.s32.totalorder %s185_s27, %s185_s27 }
  0x1a   : > { %p765_p3 = scmp.lt.s32.totalorder %s756_s5, %s756_s5 }
  0x1b   : > { %p759_p2 = pnand %p757_p1, %p743_p8 }
  0x1c   : > { %p766_p7 = por %p765_p3, %p764_p4 }
  0x1d   : > { %p760_p5 = pneg %p759_p2 }
  0x1f   : > { %p767_p9 = pnand %p766_p7, %p760_p5 }
  0x21   : > { %770 = shalt.err (!%p767_p9)
}
  0x22   : > { %s804_s6 = smov [#allocation4]   ;;  %p1084_p10 = scmp.ne.s32.totalorder %s1081_s20, 0 }
  0x23   : > { %691 = dma.vmem_to_smem (!%p870_p6), %s185_s27, 16, %s804_s6, [#allocation5]  }
  0x24   : > { %208 = sbr.rel (%p1084_p10) target bundleno = 136 (0x88), region = 32  ;;  %p1085_p11 = scmp.ne.s32.totalorder (!%p1084_p10), %s1082_s21, 0 }
  0x2b   : > { %784 = dma.done.wait (%p1085_p11), [#allocation3], 128  }
  0x2c   : > { %786 = vsyncadd (%p1085_p11), [#allocation3], 4294967168 }
  0x2d   : > { %788 = dma.done.wait (%p1085_p11), [#allocation5], 16  }
  0x2e   : > { %790 = vsyncadd (%p1085_p11), [#allocation5], 4294967280 }
  0x2f   : > { %218 = sfence }
  0x30   : > { %p251_p3 = scmp.lt.s32.totalorder %s793_s15, 1  ;;  %s280_s7 = sld [smem:[#allocation2]]  ;;  %v805_v61 = vmov 0  }
  0x31   : > { %s283_s8 = sld [smem:[#allocation4]]  ;;  %s636_s9 = sld [smem:[#allocation2 + $0x1]] }
  0x32   : > { %s1091_s15 = smov (!%p251_p3, %s793_s15), 1  ;;  %s637_s10 = sld [smem:[#allocation2 + $0x2]] }
  0x33   : > { %s638_s11 = sld [smem:[#allocation2 + $0x3]]  ;;  %s676_s12 = sshll.u32 %s1091_s15, 3 }
  0x34   : > { %s258_s18 = scalar_lea.vmem %s1073_s0, %s676_s12  ;;  %s639_s20 = sld [smem:[#allocation2 + $0x80]] }
  0x35   : > { %v898_v0 = vld [vmem:[%s258_s18] sm:$0x3]  ;;  %v900_v1 = vld [vmem:[%s258_s18 + $0x2] sm:$0x3]  ;;  %v902_v3 = vld [vmem:[%s258_s18 + $0x4] sm:$0x3] }
  0x36   : > { %v281_v2 = vstv %s280_s7  ;;  %s905_s21 = sld [smem:[#allocation4 + $0x1]]  ;;  %v907_v7 = vld [vmem:[%s258_s18 + $0x6] sm:$0x3]  ;;  %s642_s23 = sld [smem:[#allocation2 + $0x82]] }
  0x37   : > { %v282_v4 = vmul.f32 %v281_v2, %v898_v0  ;;  %v284_v5 = vstv %s283_s8  ;;  %v287_v6 = vstv %s636_s9  ;;  %s641_s22 = sld [smem:[#allocation2 + $0x81]]  ;;  %s643_s24 = sld [smem:[#allocation2 + $0x83]] }
  0x38   : > { %v288_v8 = vmul.f32 %v900_v1, %v287_v6  ;;  %v291_v10 = vstv %s637_s10  ;;  %s910_s25 = sld [smem:[#allocation2 + $0x100]]  ;;  %s913_s26 = sld [smem:[#allocation4 + $0x2]] }
  0x39   : > { %v285_v9 = vadd.f32 %v284_v5, %v282_v4  ;;  %v295_v11 = vstv %s638_s11  ;;  %v292_v12 = vmul.f32 %v902_v3, %v291_v10  ;;  %s915_s27 = sld [smem:[#allocation2 + $0x101]]  ;;  %s918_s28 = sld [smem:[#allocation2 + $0x102]] }
  0x3a   : > { %v296_v14 = vmul.f32 %v907_v7, %v295_v11  ;;  %s920_s29 = sld [smem:[#allocation2 + $0x103]]  ;;  %s922_s30 = sld [smem:[#allocation2 + $0x180]]  ;;  %v299_v16 = vstv %s639_s20 }
  0x3b   : > { %v289_v13 = vadd.f32 %v288_v8, %v285_v9  ;;  %s924_s5 = sld [smem:[#allocation4 + $0x3]]  ;;  %s927_s6 = sld [smem:[#allocation2 + $0x181]]  ;;  %v300_v18 = vmul.f32 %v299_v16, %v898_v0 }
  0x3c   : > { %v302_v17 = vstv %s905_s21  ;;  %s929_s7 = sld [smem:[#allocation2 + $0x182]]  ;;  %v309_v20 = vstv %s642_s23  ;;  %s932_s8 = sld [smem:[#allocation2 + $0x183]] }
  0x3d   : > { %v293_v15 = vadd.f32 %v292_v12, %v289_v13  ;;  %v305_v19 = vstv %s641_s22  ;;  %s934_s9 = sld [smem:[#allocation2 + $0x200]]  ;;  %v310_v23 = vmul.f32 %v902_v3, %v309_v20  ;;  %v313_v24 = vstv %s643_s24  ;;  %s940_s10 = sld [smem:[#allocation4 + $0x4]] }
  0x3e   : > { %v306_v22 = vmul.f32 %v900_v1, %v305_v19  ;;  %s942_s11 = sld [smem:[#allocation2 + $0x201]]  ;;  %v303_v25 = vadd.f32 %v302_v17, %v300_v18  ;;  %v314_v26 = vmul.f32 %v907_v7, %v313_v24  ;;  %v320_v27 = vstv %s910_s25  ;;  %s947_s12 = sld [smem:[#allocation2 + $0x202]] }
  0x3f   : > { %v936_v21 = vadd.f32 %v296_v14, %v293_v15  ;;  %v323_v28 = vstv %s913_s26  ;;  %v321_v29 = vmul.f32 %v320_v27, %v898_v0  ;;  %v326_v30 = vstv %s915_s27  ;;  %s956_s13 = sld [smem:[#allocation2 + $0x203]]  ;;  %s958_s14 = sld [smem:[#allocation2 + $0x280]] }
  0x40   : > { %v330_v31 = vstv %s918_s28  ;;  %v334_v32 = vstv %s920_s29  ;;  %v307_v33 = vadd.f32 %v306_v22, %v303_v25  ;;  %v327_v34 = vmul.f32 %v900_v1, %v326_v30  ;;  %s963_s18 = sld [smem:[#allocation4 + $0x5]]  ;;  %s968_s20 = sld [smem:[#allocation2 + $0x281]] }
  0x41   : > { %v331_v35 = vmul.f32 %v902_v3, %v330_v31  ;;  %v335_v36 = vmul.f32 %v907_v7, %v334_v32  ;;  %v324_v37 = vadd.f32 %v323_v28, %v321_v29  ;;  %v341_v38 = vstv %s922_s30  ;;  %s973_s21 = sld [smem:[#allocation2 + $0x282]]  ;;  %s975_s22 = sld [smem:[#allocation2 + $0x283]] }
  0x42   : > { %v344_v39 = vstv %s924_s5  ;;  %v347_v40 = vstv %s927_s6  ;;  %v311_v41 = vadd.f32 %v310_v23, %v307_v33  ;;  %v342_v42 = vmul.f32 %v341_v38, %v898_v0  ;;  %s984_s23 = sld [smem:[#allocation2 + $0x300]]  ;;  %s989_s24 = sld [smem:[#allocation4 + $0x6]] }
  0x43   : > { %v348_v43 = vmul.f32 %v900_v1, %v347_v40  ;;  %v351_v44 = vstv %s929_s7  ;;  %v328_v45 = vadd.f32 %v327_v34, %v324_v37  ;;  %v355_v47 = vstv %s932_s8  ;;  %s996_s25 = sld [smem:[#allocation2 + $0x301]]  ;;  %s998_s26 = sld [smem:[#allocation2 + $0x302]] }
  0x44   : > { %v352_v46 = vmul.f32 %v902_v3, %v351_v44  ;;  %v362_v48 = vstv %s934_s9  ;;  %v977_v49 = vadd.f32 %v314_v26, %v311_v41  ;;  %v345_v50 = vadd.f32 %v344_v39, %v342_v42  ;;  %s1002_s27 = sld [smem:[#allocation2 + $0x303]]  ;;  %s1004_s28 = sld [smem:[#allocation2 + $0x380]] }
  0x45   : > { %v356_v51 = vmul.f32 %v907_v7, %v355_v47  ;;  %v363_v52 = vmul.f32 %v362_v48, %v898_v0  ;;  %v332_v53 = vadd.f32 %v331_v35, %v328_v45  ;;  %v365_v54 = vstv %s940_s10  ;;  %s1010_s29 = sld [smem:[#allocation4 + $0x7]]  ;;  %s1012_s30 = sld [smem:[#allocation2 + $0x381]] }
  0x46   : > { %v368_v55 = vstv %s942_s11  ;;  %v372_v56 = vstv %s947_s12  ;;  %vm316_vm0 = vcmp.gt.f32.partialorder %v977_v49, %v936_v21  ;;  %v349_v57 = vadd.f32 %v348_v43, %v345_v50  ;;  %s1020_s5 = sld [smem:[#allocation2 + $0x382]]  ;;  %s1022_s6 = sld [smem:[#allocation2 + $0x383]] }
  0x47   : > { %v366_v58 = vadd.f32 %v365_v54, %v363_v52  ;;  %v369_v59 = vmul.f32 %v900_v1, %v368_v55  ;;  %v317_v60 = vsel %vm316_vm0, %v977_v49, %v936_v21  ;;  %v318_v62 = vsel %vm316_vm0, 1, %v805_v61  ;;  %s631_s7 = sshll.u32 %s1091_s15, 1 }
  0x48   : > { %v993_v63 = vadd.f32 %v335_v36, %v332_v53  ;;  %v373_v2 = vmul.f32 %v902_v3, %v372_v56  ;;  %v353_v4 = vadd.f32 %v352_v46, %v349_v57  ;;  %v376_v6 = vstv %s956_s13  ;;  %s272_s10 = scalar_lea.vmem %s1077_s4, %s631_s7  ;;  %s265_s13 = scalar_lea.vmem %s1076_s3, %s631_s7 }
  0x49   : > { %v370_v5 = vadd.f32 %v369_v59, %v366_v58  ;;  %v383_v8 = vstv %s958_s14  ;;  %v377_v9 = vmul.f32 %v907_v7, %v376_v6  ;;  %v386_v11 = vstv %s963_s18 }
  0x4a   : > { %vm337_vm1 = vcmp.gt.f32.partialorder %v993_v63, %v317_v60  ;;  %v384_v10 = vmul.f32 %v383_v8, %v898_v0  ;;  %v1015_v14 = vadd.f32 %v356_v51, %v353_v4  ;;  %v389_v17 = vstv %s968_s20 }
  0x4b   : > { %v338_v12 = vsel %vm337_vm1, %v993_v63, %v317_v60  ;;  %v339_v13 = vsel %vm337_vm1, 2, %v318_v62  ;;  %v374_v15 = vadd.f32 %v373_v2, %v370_v5  ;;  %v393_v18 = vstv %s973_s21 }
  0x4c   : > { %v387_v16 = vadd.f32 %v386_v11, %v384_v10  ;;  %v397_v19 = vstv %s975_s22  ;;  %vm358_vm2 = vcmp.gt.f32.partialorder %v1015_v14, %v338_v12  ;;  %v390_v22 = vmul.f32 %v900_v1, %v389_v17 }
  0x4d   : > { %v378_v20 = vadd.f32 %v377_v9, %v374_v15  ;;  %v394_v23 = vmul.f32 %v902_v3, %v393_v18  ;;  %v359_v24 = vsel %vm358_vm2, %v1015_v14, %v338_v12  ;;  %v398_v25 = vmul.f32 %v907_v7, %v397_v19 }
  0x4e   : > { %v404_v26 = vstv %s984_s23  ;;  %v391_v27 = vadd.f32 %v390_v22, %v387_v16  ;;  %v407_v29 = vstv %s989_s24  ;;  %v360_v30 = vsel %vm358_vm2, 3, %v339_v13 }
  0x4f   : > { %vm379_vm3 = vcmp.gt.f32.partialorder %v378_v20, %v359_v24  ;;  %v405_v28 = vmul.f32 %v404_v26, %v898_v0  ;;  %v410_v32 = vstv %s996_s25  ;;  %v414_v33 = vstv %s998_s26 }
  0x50   : > { %v380_v31 = vsel %vm379_vm3, %v378_v20, %v359_v24  ;;  %v395_v34 = vadd.f32 %v394_v23, %v391_v27  ;;  %v411_v36 = vmul.f32 %v900_v1, %v410_v32  ;;  %v415_v37 = vmul.f32 %v902_v3, %v414_v33 }
  0x51   : > { %v408_v35 = vadd.f32 %v407_v29, %v405_v28  ;;  %v418_v38 = vstv %s1002_s27  ;;  %v425_v39 = vstv %s1004_s28  ;;  %v428_v40 = vstv %s1010_s29 }
  0x52   : > { %v431_v41 = vstv %s1012_s30  ;;  %v399_v42 = vadd.f32 %v398_v25, %v395_v34  ;;  %v419_v44 = vmul.f32 %v907_v7, %v418_v38  ;;  %v426_v45 = vmul.f32 %v425_v39, %v898_v0 }
  0x53   : > { %v412_v43 = vadd.f32 %v411_v36, %v408_v35  ;;  %v381_v46 = vsel %vm379_vm3, 4, %v360_v30  ;;  %v432_v47 = vmul.f32 %v900_v1, %v431_v41  ;;  %v435_v48 = vstv %s1020_s5 }
  0x54   : > { %v439_v50 = vstv %s1022_s6  ;;  %vm400_vm4 = vcmp.gt.f32.partialorder %v399_v42, %v380_v31  ;;  %v429_v52 = vadd.f32 %v428_v40, %v426_v45  ;;  %v436_v53 = vmul.f32 %v902_v3, %v435_v48 }
  0x55   : > { %v416_v51 = vadd.f32 %v415_v37, %v412_v43  ;;  %v401_v54 = vsel %vm400_vm4, %v399_v42, %v380_v31  ;;  %v440_v57 = vmul.f32 %v907_v7, %v439_v50  ;;  %v402_v58 = vsel %vm400_vm4, 5, %v381_v46 }
  0x56   : > { %v433_v56 = vadd.f32 %v432_v47, %v429_v52 }
  0x57   : > { %v420_v55 = vadd.f32 %v419_v44, %v416_v51 }
  0x58   : > { %v437_v0 = vadd.f32 %v436_v53, %v433_v56 }
  0x59   : > { %vm421_vm5 = vcmp.gt.f32.partialorder %v420_v55, %v401_v54 }
  0x5a   : > { %v422_v59 = vsel %vm421_vm5, %v420_v55, %v401_v54  ;;  %v423_v60 = vsel %vm421_vm5, 6, %v402_v58  ;;  %v441_v1 = vadd.f32 %v440_v57, %v437_v0 }
  0x5c   : > { %vm442_vm6 = vcmp.gt.f32.partialorder %v441_v1, %v422_v59 }
  0x5d   : > { %v443_v61 = vsel %vm442_vm6, %v441_v1, %v422_v59  ;;  %v444_v3 = vsel %vm442_vm6, 7, %v423_v60 }
  0x5e   : > { %v445_v62 = vsub.f32 %v936_v21, %v443_v61  ;;  %v448_v2 = vsub.f32 %v977_v49, %v443_v61  ;;  %v452_v7 = vsub.f32 %v993_v63, %v443_v61  ;;  %v456_v4 = vsub.f32 %v1015_v14, %v443_v61  ;;  %478 = vst [vmem:[%s272_s10] sm:$0x3] %v444_v3 }
  0x5f   : > { %v460_v5 = vsub.f32 %v378_v20, %v443_v61  ;;  %v464_v11 = vsub.f32 %v399_v42, %v443_v61  ;;  %v468_v13 = vsub.f32 %v420_v55, %v443_v61  ;;  %v472_v15 = vsub.f32 %v441_v1, %v443_v61 }
  0x60   : > { %v446_v6 = vmul.f32 1.442695, %v445_v62  ;;  %v449_v8 = vmul.f32 1.442695, %v448_v2  ;;  %v453_v9 = vmul.f32 1.442695, %v452_v7 }
  0x61   : > { %v457_v10 = vmul.f32 1.442695, %v456_v4  ;;  %v461_v12 = vmul.f32 1.442695, %v460_v5  ;;  %v465_v21 = vmul.f32 1.442695, %v464_v11 }
  0x62   : > { %723 = vpow2.f32 %v446_v6  ;;  %v469_v49 = vmul.f32 1.442695, %v468_v13  ;;  %v473_v63 = vmul.f32 1.442695, %v472_v15 }
  0x63   : > { %725 = vpow2.f32 %v449_v8 }
  0x64   : > { %727 = vpow2.f32 %v453_v9 }
  0x65   : > { %729 = vpow2.f32 %v457_v10 }
  0x66   : > { %731 = vpow2.f32 %v461_v12 }
  0x67   : > { %733 = vpow2.f32 %v465_v21 }
  0x68   : > { %735 = vpow2.f32 %v469_v49 }
  0x69   : > { %737 = vpow2.f32 %v473_v63 }
  0x6c   : > { %v724_v14 = vpop.eup %723 }
  0x6d   : > { %v726_v16 = vpop.eup %725 }
  0x6e   : > { %v728_v17 = vpop.eup %727  ;;  %v451_v18 = vadd.f32 %v726_v16, %v724_v14 }
  0x6f   : > { %v730_v19 = vpop.eup %729 }
  0x70   : > { %v455_v20 = vadd.f32 %v728_v17, %v451_v18  ;;  %v732_v22 = vpop.eup %731 }
  0x71   : > { %v734_v24 = vpop.eup %733 }
  0x72   : > { %v459_v23 = vadd.f32 %v730_v19, %v455_v20  ;;  %v736_v26 = vpop.eup %735 }
  0x73   : > { %v738_v28 = vpop.eup %737 }
  0x74   : > { %v463_v25 = vadd.f32 %v732_v22, %v459_v23 }
  0x76   : > { %v467_v27 = vadd.f32 %v734_v24, %v463_v25 }
  0x78   : > { %v471_v29 = vadd.f32 %v736_v26, %v467_v27 }
  0x7a   : > { %v475_v30 = vadd.f32 %v738_v28, %v471_v29 }
  0x7c   : > { %739 = vrcp.f32 %v475_v30 }
  0x86   : > { %v740_v31 = vpop.eup %739 }
  0x87   : > { %477 = vst [vmem:[%s265_s13] sm:$0x3] %v740_v31 }
  0x88 PF: > { %s17_s17 = sadd.s32 1, %s801_s17   ;;  %s1086_s15 = smov %s797_s16 }
  0x89   : > { %p14_p4 = scmp.ge.s32.totalorder %s17_s17, 4   ;;  %s1087_s16 = smov %s1089_s19 }
  0x8b   :  { %16 = sbr.rel (!%p14_p4) target bundleno = 3 (0x3), region = 86 }
  0x92   :  { %524 = vsyncpa [#allocation3], 1 }
  0x93   :  { %526 = vsyncpa [#allocation3 + $0x1], 1 }
  0x94   :  { %527 = vsyncpa [#allocation5], 1 }

</bundles_post_ra>
